<compile_context>
chip_gen: v7x
topology: tpu7x:2x2x1
jax: 0.10.0
libtpu: 0.0.40
codegen_flags: <defaults>
</compile_context>

<pallas_src>
import jax
import jax.numpy as jnp
from jax.experimental import pallas as pl
from jax.experimental.pallas import tpu as pltpu


def _hybrid_kernel(
    u_ids_ref, i_ids_ref,                 # (TILE_B, 1) int32   streamed
    u_feat_ref, c_feat_ref, i_feat_ref,   # (TILE_B, F*) f32    streamed
    u_table_ref, i_table_ref,             # (NU_p, DA), (NI_p, DA) f32  VMEM-resident
    w_u_ref, w_c_ref, w_i_ref,            # (F*, DA) f32        VMEM-resident
    b_uc_ref, b_it_ref,                   # (1, DA) f32         VMEM-resident
    out_ref,                              # (1, TILE_B) f32     lane-dense
):
    f32 = jnp.float32
    tb = u_ids_ref.shape[0]
    nu = u_table_ref.shape[0]
    ni = i_table_ref.shape[0]

    # Fused embedding + latent-bias gather: one_hot(ids) @ augmented table (MXU).
    # (Garbage ids in the ragged last tile just produce garbage rows, which only
    # affect their own masked output lanes.)
    oh_u = (jax.lax.broadcasted_iota(jnp.int32, (tb, nu), 1)
            == u_ids_ref[...]).astype(f32)                       # (TILE_B, NU_p)
    oh_i = (jax.lax.broadcasted_iota(jnp.int32, (tb, ni), 1)
            == i_ids_ref[...]).astype(f32)                       # (TILE_B, NI_p)
    u = jnp.dot(oh_u, u_table_ref[...], preferred_element_type=f32)   # (TILE_B, DA)
    it = jnp.dot(oh_i, i_table_ref[...], preferred_element_type=f32)  # (TILE_B, DA)

    # user_rep += user(user_features) + context(context_features)
    # (two small canonical matmuls; head weights carry two zero columns so they
    #  never touch the bias/ones augmentation lanes)
    u = u + jnp.dot(u_feat_ref[...], w_u_ref[...], preferred_element_type=f32)
    u = u + jnp.dot(c_feat_ref[...], w_c_ref[...], preferred_element_type=f32)
    u = u + b_uc_ref[...]

    # item_rep += item(item_features)
    it = it + jnp.dot(i_feat_ref[...], w_i_ref[...], preferred_element_type=f32)
    it = it + b_it_ref[...]

    # Lane-reduce (u * it) over the DA augmented columns:
    #   lanes [0, D)  -> sum_d u_rep*item_rep   (the dot product)
    #   lane  D       -> user_bias * 1
    #   lane  D+1     -> 1 * item_bias
    # Produced directly as a lane-dense (1, TILE_B) row via an MXU contraction
    # with a ones vector (same form as the previously validated kernel); per the
    # review this is secondary and hidden under DMA at these sizes.
    prod = u * it                                                # (TILE_B, DA)
    ones = jnp.ones((1, prod.shape[1]), f32)
    out_ref[...] = jax.lax.dot_general(
        ones, prod,
        dimension_numbers=(((1,), (1,)), ((), ())),              # contract over DA
        preferred_element_type=f32)                              # (1, TILE_B)


def hybrid_forward(
    user_ids, item_ids,                         # (B,) int32 id vectors
    user_table, item_table,                     # (NU, D), (NI, D) latent embeddings
    user_bias_table, item_bias_table,           # (NU,), (NI,) latent biases
    user_feat, w_user, b_user,                  # user head    Linear(FU, D)
    ctx_feat, w_ctx, b_ctx,                     # context head Linear(FC, D)
    item_feat, w_item, b_item,                  # item head    Linear(FI, D)
    *,
    tile_b: int = 2048,                         # v5e/v6e: 2048-4096; v7x: up to 8192
                                                # (keep num_tiles >= 2 for both TCs)
    vmem_limit_bytes: int = 48 * 1024 * 1024,   # safe on all gens; raise to 64-96MiB
                                                # on v5e/v6e if tile_b > 4096
):
    if tile_b % 128 != 0:
        raise ValueError("tile_b must be a multiple of 128 (lane width)")

    f32 = jnp.float32
    B = user_ids.shape[0]
    NU, D = user_table.shape
    NI = item_table.shape[0]
    FU, FC, FI = user_feat.shape[1], ctx_feat.shape[1], item_feat.shape[1]
    DA = D + 2                                   # + [bias, ones] augmentation lanes

    # --- tiny, parameter-sized (NOT per-batch) augmentation of the tables -----
    def _round8(n):
        return ((n + 7) // 8) * 8
    NU_p, NI_p = _round8(NU), _round8(NI)

    u_aug = jnp.zeros((NU_p, DA), f32)
    u_aug = u_aug.at[:NU, :D].set(user_table.astype(f32))
    u_aug = u_aug.at[:NU, D].set(user_bias_table.astype(f32))
    u_aug = u_aug.at[:NU, D + 1].set(1.0)

    i_aug = jnp.zeros((NI_p, DA), f32)
    i_aug = i_aug.at[:NI, :D].set(item_table.astype(f32))
    i_aug = i_aug.at[:NI, D].set(1.0)
    i_aug = i_aug.at[:NI, D + 1].set(item_bias_table.astype(f32))

    def _aug_w(w):   # (F, D) -> (F, DA) with zero bias/ones columns
        return jnp.pad(w.astype(f32), ((0, 0), (0, 2)))

    def _aug_b(b):   # (D,)/(1, D) -> (1, DA)
        return jnp.pad(b.reshape(1, -1).astype(f32), ((0, 0), (0, 2)))

    w_u, w_c, w_i = _aug_w(w_user), _aug_w(w_ctx), _aug_w(w_item)
    b_uc = _aug_b(b_user) + _aug_b(b_ctx)
    b_it = _aug_b(b_item)

    # ids as (B, 1) int32 columns (reshape only; no per-batch data pass).
    uid = user_ids.astype(jnp.int32).reshape(B, 1)
    iid = item_ids.astype(jnp.int32).reshape(B, 1)

    # --- grid / BlockSpecs -----------------------------------------------------
    num_tiles = pl.cdiv(B, tile_b)               # ragged last block is masked
    row_spec = lambda cols: pl.BlockSpec((tile_b, cols), lambda b: (b, 0))
    const_spec = lambda shape: pl.BlockSpec(shape, lambda b: (0, 0))
    out_spec = pl.BlockSpec((1, tile_b), lambda b: (0, b))
    # If profiling shows exposed DMA on v7x, add pipeline_mode=pl.Buffered(3)
    # to the streamed row_spec blocks.

    flops = 2 * B * DA * (NU_p + NI_p + FU + FC + FI) + 6 * B * DA
    bytes_accessed = (
        2 * B * 4                                   # ids
        + B * (FU + FC + FI) * 4                    # feature streams
        + (NU_p + NI_p + FU + FC + FI + 2) * DA * 4 # resident params
        + B * 4                                     # output
    )

    out = pl.pallas_call(
        _hybrid_kernel,
        out_shape=jax.ShapeDtypeStruct((1, B), f32),
        grid=(num_tiles,),
        in_specs=[
            row_spec(1), row_spec(1),               # user_ids, item_ids
            row_spec(FU), row_spec(FC), row_spec(FI),
            const_spec((NU_p, DA)), const_spec((NI_p, DA)),
            const_spec((FU, DA)), const_spec((FC, DA)), const_spec((FI, DA)),
            const_spec((1, DA)), const_spec((1, DA)),
        ],
        out_specs=out_spec,
        compiler_params=pltpu.CompilerParams(
            dimension_semantics=("parallel",),       # 2 TCs on v7x
            vmem_limit_bytes=vmem_limit_bytes,
        ),
        cost_estimate=pl.CostEstimate(
            flops=flops, transcendentals=0, bytes_accessed=bytes_accessed),
    )(
        uid, iid,
        user_feat, ctx_feat, item_feat,
        u_aug, i_aug,
        w_u, w_c, w_i,
        b_uc, b_it,
    )
    return out[0]                                   # (B,), matches PyTorch output


def reference_forward(
    user_ids, item_ids,
    user_table, item_table, user_bias_table, item_bias_table,
    user_feat, w_user, b_user,
    ctx_feat, w_ctx, b_ctx,
    item_feat, w_item, b_item,
):
    """Pure-f32 JAX reference mirroring the PyTorch module exactly."""
    u = user_table[user_ids] + user_feat @ w_user + b_user + ctx_feat @ w_ctx + b_ctx
    it = item_table[item_ids] + item_feat @ w_item + b_item
    return (u * it).sum(1) + user_bias_table[user_ids] + item_bias_table[item_ids]


if __name__ == "__main__":
    key = jax.random.PRNGKey(0)
    keys = jax.random.split(key, 16)

    # Small, module-consistent sizes. B=200 with tile_b=128 exercises a
    # multi-step grid AND the ragged (masked) last block.
    B = 200          # batch of (user_id, item_id) pairs
    D = 32           # latent / embedding dimension
    FU, FC, FI = 16, 16, 16
    NUM_USERS, NUM_ITEMS = 10, 12

    # Latent module parameters (embedding + bias tables).
    user_table = jax.random.normal(keys[0], (NUM_USERS, D), jnp.float32) * 0.1
    item_table = jax.random.normal(keys[1], (NUM_ITEMS, D), jnp.float32) * 0.1
    user_bias_table = jax.random.normal(keys[2], (NUM_USERS,), jnp.float32) * 0.1
    item_bias_table = jax.random.normal(keys[3], (NUM_ITEMS,), jnp.float32) * 0.1

    # Optional feature heads: Linear(F, D) stored as (F, D) (i.e. W^T) + (1, D) bias.
    w_user = jax.random.normal(keys[4], (FU, D), jnp.float32) * 0.1
    b_user = jax.random.normal(keys[5], (1, D), jnp.float32) * 0.1
    w_ctx = jax.random.normal(keys[6], (FC, D), jnp.float32) * 0.1
    b_ctx = jax.random.normal(keys[7], (1, D), jnp.float32) * 0.1
    w_item = jax.random.normal(keys[8], (FI, D), jnp.float32) * 0.1
    b_item = jax.random.normal(keys[9], (1, D), jnp.float32) * 0.1

    # Inputs.
    user_ids = jax.random.randint(keys[10], (B,), 0, NUM_USERS)
    item_ids = jax.random.randint(keys[11], (B,), 0, NUM_ITEMS)
    user_feat = jax.random.normal(keys[12], (B, FU), jnp.float32)
    ctx_feat = jax.random.normal(keys[13], (B, FC), jnp.float32)
    item_feat = jax.random.normal(keys[14], (B, FI), jnp.float32)

    out = hybrid_forward(
        user_ids, item_ids,
        user_table, item_table, user_bias_table, item_bias_table,
        user_feat, w_user, b_user,
        ctx_feat, w_ctx, b_ctx,
        item_feat, w_item, b_item,
        tile_b=128,
    )
    out = jax.block_until_ready(out)

    ref = reference_forward(
        user_ids, item_ids,
        user_table, item_table, user_bias_table, item_bias_table,
        user_feat, w_user, b_user,
        ctx_feat, w_ctx, b_ctx,
        item_feat, w_item, b_item,
    )
    assert out.shape == (B,)
    assert jnp.allclose(out, ref, atol=1e-3, rtol=1e-3), float(
        jnp.max(jnp.abs(out - ref)))

    print("KERNEL_OK")
</pallas_src>

<mosaic_0001>
module attributes {stable_mosaic.version = 11 : i64} {
  func.func @_hybrid_kernel(%arg0: i32, %arg1: memref<128x1xi32, #tpu.memory_space<vmem>>, %arg2: memref<128x1xi32, #tpu.memory_space<vmem>>, %arg3: memref<128x16xf32, #tpu.memory_space<vmem>>, %arg4: memref<128x16xf32, #tpu.memory_space<vmem>>, %arg5: memref<128x16xf32, #tpu.memory_space<vmem>>, %arg6: memref<16x34xf32, #tpu.memory_space<vmem>>, %arg7: memref<16x34xf32, #tpu.memory_space<vmem>>, %arg8: memref<16x34xf32, #tpu.memory_space<vmem>>, %arg9: memref<16x34xf32, #tpu.memory_space<vmem>>, %arg10: memref<16x34xf32, #tpu.memory_space<vmem>>, %arg11: memref<1x34xf32, #tpu.memory_space<vmem>>, %arg12: memref<1x34xf32, #tpu.memory_space<vmem>>, %arg13: memref<1x128xf32, #tpu.memory_space<vmem>>) attributes {dimension_semantics = [#tpu.dimension_semantics<parallel>], iteration_bounds = array<i64: 2>, scalar_prefetch = 0 : i64, scratch_operands = 0 : i64, tpu.core_type = #tpu.core_type<tc>, window_params = [{transform_indices = @transform_0, window_bounds = array<i64: 128, 1>}, {transform_indices = @transform_1, window_bounds = array<i64: 128, 1>}, {transform_indices = @transform_2, window_bounds = array<i64: 128, 16>}, {transform_indices = @transform_3, window_bounds = array<i64: 128, 16>}, {transform_indices = @transform_4, window_bounds = array<i64: 128, 16>}, {pipeline_mode = #tpu.pipeline_mode<synchronous>, transform_indices = @transform_5, window_bounds = array<i64: 16, 34>}, {pipeline_mode = #tpu.pipeline_mode<synchronous>, transform_indices = @transform_6, window_bounds = array<i64: 16, 34>}, {pipeline_mode = #tpu.pipeline_mode<synchronous>, transform_indices = @transform_7, window_bounds = array<i64: 16, 34>}, {pipeline_mode = #tpu.pipeline_mode<synchronous>, transform_indices = @transform_8, window_bounds = array<i64: 16, 34>}, {pipeline_mode = #tpu.pipeline_mode<synchronous>, transform_indices = @transform_9, window_bounds = array<i64: 16, 34>}, {pipeline_mode = #tpu.pipeline_mode<synchronous>, transform_indices = @transform_10, window_bounds = array<i64: 1, 34>}, {pipeline_mode = #tpu.pipeline_mode<synchronous>, transform_indices = @transform_11, window_bounds = array<i64: 1, 34>}, {transform_indices = @transform_12, window_bounds = array<i64: 1, 128>}]} {
    %0 = tpu.iota {dimensions = array<i32: 1>} : vector<128x16xi32>
    %c0 = arith.constant 0 : index
    %c0_0 = arith.constant 0 : index
    %1 = vector.load %arg1[%c0, %c0_0] : memref<128x1xi32, #tpu.memory_space<vmem>>, vector<128x1xi32>
    %2 = vector.broadcast %1 : vector<128x1xi32> to vector<128x16xi32>
    %3 = arith.cmpi eq, %0, %2 : vector<128x16xi32>
    %4 = arith.extui %3 : vector<128x16xi1> to vector<128x16xi32>
    %5 = arith.sitofp %4 : vector<128x16xi32> to vector<128x16xf32>
    %6 = tpu.iota {dimensions = array<i32: 1>} : vector<128x16xi32>
    %c0_1 = arith.constant 0 : index
    %c0_2 = arith.constant 0 : index
    %7 = vector.load %arg2[%c0_1, %c0_2] : memref<128x1xi32, #tpu.memory_space<vmem>>, vector<128x1xi32>
    %8 = vector.broadcast %7 : vector<128x1xi32> to vector<128x16xi32>
    %9 = arith.cmpi eq, %6, %8 : vector<128x16xi32>
    %10 = arith.extui %9 : vector<128x16xi1> to vector<128x16xi32>
    %11 = arith.sitofp %10 : vector<128x16xi32> to vector<128x16xf32>
    %c0_3 = arith.constant 0 : index
    %c0_4 = arith.constant 0 : index
    %12 = vector.load %arg6[%c0_3, %c0_4] : memref<16x34xf32, #tpu.memory_space<vmem>>, vector<16x34xf32>
    %cst = arith.constant dense<0.000000e+00> : vector<128x34xf32>
    %13 = tpu.matmul %5, %12, %cst {dimension_numbers = #tpu.dot_dimension_numbers<[1], [0], [0], [1], [0, 0, 1, 1], [], []>} : vector<128x16xf32>, vector<16x34xf32>, vector<128x34xf32> -> vector<128x34xf32>
    %c0_5 = arith.constant 0 : index
    %c0_6 = arith.constant 0 : index
    %14 = vector.load %arg7[%c0_5, %c0_6] : memref<16x34xf32, #tpu.memory_space<vmem>>, vector<16x34xf32>
    %cst_7 = arith.constant dense<0.000000e+00> : vector<128x34xf32>
    %15 = tpu.matmul %11, %14, %cst_7 {dimension_numbers = #tpu.dot_dimension_numbers<[1], [0], [0], [1], [0, 0, 1, 1], [], []>} : vector<128x16xf32>, vector<16x34xf32>, vector<128x34xf32> -> vector<128x34xf32>
    %c0_8 = arith.constant 0 : index
    %c0_9 = arith.constant 0 : index
    %16 = vector.load %arg3[%c0_8, %c0_9] : memref<128x16xf32, #tpu.memory_space<vmem>>, vector<128x16xf32>
    %c0_10 = arith.constant 0 : index
    %c0_11 = arith.constant 0 : index
    %17 = vector.load %arg8[%c0_10, %c0_11] : memref<16x34xf32, #tpu.memory_space<vmem>>, vector<16x34xf32>
    %cst_12 = arith.constant dense<0.000000e+00> : vector<128x34xf32>
    %18 = tpu.matmul %16, %17, %cst_12 {dimension_numbers = #tpu.dot_dimension_numbers<[1], [0], [0], [1], [0, 0, 1, 1], [], []>} : vector<128x16xf32>, vector<16x34xf32>, vector<128x34xf32> -> vector<128x34xf32>
    %19 = arith.addf %13, %18 : vector<128x34xf32>
    %c0_13 = arith.constant 0 : index
    %c0_14 = arith.constant 0 : index
    %20 = vector.load %arg4[%c0_13, %c0_14] : memref<128x16xf32, #tpu.memory_space<vmem>>, vector<128x16xf32>
    %c0_15 = arith.constant 0 : index
    %c0_16 = arith.constant 0 : index
    %21 = vector.load %arg9[%c0_15, %c0_16] : memref<16x34xf32, #tpu.memory_space<vmem>>, vector<16x34xf32>
    %cst_17 = arith.constant dense<0.000000e+00> : vector<128x34xf32>
    %22 = tpu.matmul %20, %21, %cst_17 {dimension_numbers = #tpu.dot_dimension_numbers<[1], [0], [0], [1], [0, 0, 1, 1], [], []>} : vector<128x16xf32>, vector<16x34xf32>, vector<128x34xf32> -> vector<128x34xf32>
    %23 = arith.addf %19, %22 : vector<128x34xf32>
    %c0_18 = arith.constant 0 : index
    %c0_19 = arith.constant 0 : index
    %24 = vector.load %arg11[%c0_18, %c0_19] : memref<1x34xf32, #tpu.memory_space<vmem>>, vector<1x34xf32>
    %25 = vector.broadcast %24 : vector<1x34xf32> to vector<128x34xf32>
    %26 = arith.addf %23, %25 : vector<128x34xf32>
    %c0_20 = arith.constant 0 : index
    %c0_21 = arith.constant 0 : index
    %27 = vector.load %arg5[%c0_20, %c0_21] : memref<128x16xf32, #tpu.memory_space<vmem>>, vector<128x16xf32>
    %c0_22 = arith.constant 0 : index
    %c0_23 = arith.constant 0 : index
    %28 = vector.load %arg10[%c0_22, %c0_23] : memref<16x34xf32, #tpu.memory_space<vmem>>, vector<16x34xf32>
    %cst_24 = arith.constant dense<0.000000e+00> : vector<128x34xf32>
    %29 = tpu.matmul %27, %28, %cst_24 {dimension_numbers = #tpu.dot_dimension_numbers<[1], [0], [0], [1], [0, 0, 1, 1], [], []>} : vector<128x16xf32>, vector<16x34xf32>, vector<128x34xf32> -> vector<128x34xf32>
    %30 = arith.addf %15, %29 : vector<128x34xf32>
    %c0_25 = arith.constant 0 : index
    %c0_26 = arith.constant 0 : index
    %31 = vector.load %arg12[%c0_25, %c0_26] : memref<1x34xf32, #tpu.memory_space<vmem>>, vector<1x34xf32>
    %32 = vector.broadcast %31 : vector<1x34xf32> to vector<128x34xf32>
    %33 = arith.addf %30, %32 : vector<128x34xf32>
    %34 = arith.mulf %26, %33 : vector<128x34xf32>
    %cst_27 = arith.constant 1.000000e+00 : f32
    %35 = vector.broadcast %cst_27 : f32 to vector<1x34xf32>
    %cst_28 = arith.constant dense<0.000000e+00> : vector<1x128xf32>
    %36 = tpu.matmul %35, %34, %cst_28 {dimension_numbers = #tpu.dot_dimension_numbers<[1], [1], [0], [0], [0, 0, 1, 0], [], []>} : vector<1x34xf32>, vector<128x34xf32>, vector<1x128xf32> -> vector<1x128xf32>
    %c0_29 = arith.constant 0 : index
    %c0_30 = arith.constant 0 : index
    %37 = vector.load %arg13[%c0_29, %c0_30] : memref<1x128xf32, #tpu.memory_space<vmem>>, vector<1x128xf32>
    tpu.vector_store %arg13[%c0_29, %c0_30], %36 {strides = array<i32>} : memref<1x128xf32, #tpu.memory_space<vmem>>, vector<1x128xf32>,
    return
  }
  func.func @transform_0(%arg0: i32) -> (i32, i32) {
    %c0_i32 = arith.constant 0 : i32
    %c0_i32_0 = arith.constant 0 : i32
    return %arg0, %c0_i32 : i32, i32
  }
  func.func @transform_1(%arg0: i32) -> (i32, i32) {
    %c0_i32 = arith.constant 0 : i32
    %c0_i32_0 = arith.constant 0 : i32
    return %arg0, %c0_i32 : i32, i32
  }
  func.func @transform_2(%arg0: i32) -> (i32, i32) {
    %c0_i32 = arith.constant 0 : i32
    %c0_i32_0 = arith.constant 0 : i32
    return %arg0, %c0_i32 : i32, i32
  }
  func.func @transform_3(%arg0: i32) -> (i32, i32) {
    %c0_i32 = arith.constant 0 : i32
    %c0_i32_0 = arith.constant 0 : i32
    return %arg0, %c0_i32 : i32, i32
  }
  func.func @transform_4(%arg0: i32) -> (i32, i32) {
    %c0_i32 = arith.constant 0 : i32
    %c0_i32_0 = arith.constant 0 : i32
    return %arg0, %c0_i32 : i32, i32
  }
  func.func @transform_5(%arg0: i32) -> (i32, i32) {
    %c0_i32 = arith.constant 0 : i32
    %c0_i32_0 = arith.constant 0 : i32
    %c0_i32_1 = arith.constant 0 : i32
    return %c0_i32, %c0_i32_0 : i32, i32
  }
  func.func @transform_6(%arg0: i32) -> (i32, i32) {
    %c0_i32 = arith.constant 0 : i32
    %c0_i32_0 = arith.constant 0 : i32
    %c0_i32_1 = arith.constant 0 : i32
    return %c0_i32, %c0_i32_0 : i32, i32
  }
  func.func @transform_7(%arg0: i32) -> (i32, i32) {
    %c0_i32 = arith.constant 0 : i32
    %c0_i32_0 = arith.constant 0 : i32
    %c0_i32_1 = arith.constant 0 : i32
    return %c0_i32, %c0_i32_0 : i32, i32
  }
  func.func @transform_8(%arg0: i32) -> (i32, i32) {
    %c0_i32 = arith.constant 0 : i32
    %c0_i32_0 = arith.constant 0 : i32
    %c0_i32_1 = arith.constant 0 : i32
    return %c0_i32, %c0_i32_0 : i32, i32
  }
  func.func @transform_9(%arg0: i32) -> (i32, i32) {
    %c0_i32 = arith.constant 0 : i32
    %c0_i32_0 = arith.constant 0 : i32
    %c0_i32_1 = arith.constant 0 : i32
    return %c0_i32, %c0_i32_0 : i32, i32
  }
  func.func @transform_10(%arg0: i32) -> (i32, i32) {
    %c0_i32 = arith.constant 0 : i32
    %c0_i32_0 = arith.constant 0 : i32
    %c0_i32_1 = arith.constant 0 : i32
    return %c0_i32, %c0_i32_0 : i32, i32
  }
  func.func @transform_11(%arg0: i32) -> (i32, i32) {
    %c0_i32 = arith.constant 0 : i32
    %c0_i32_0 = arith.constant 0 : i32
    %c0_i32_1 = arith.constant 0 : i32
    return %c0_i32, %c0_i32_0 : i32, i32
  }
  func.func @transform_12(%arg0: i32) -> (i32, i32) {
    %c0_i32 = arith.constant 0 : i32
    %c0_i32_0 = arith.constant 0 : i32
    return %c0_i32, %arg0 : i32, i32
  }
}

</mosaic_0001>

<bundles_post_ra>
// kernel: tpu_custom_call.1
= control target key start
LH: loop header
LB: loop body
LE: loop exit
PB: predicated region body
PF: predicated region fallthrough
CT: control target
= control target key end

     0   :  { %s3341_s0 = inlined_call_operand.vmem [shape: s32[200,1], index: 0, kind: input, shape index: {}]   ;;  %s3342_s1 = inlined_call_operand.vmem [shape: s32[200,1], index: 1, kind: input, shape index: {}]   ;;  %s3343_s2 = inlined_call_operand.vmem [shape: f32[200,16], index: 2, kind: input, shape index: {}]   ;;  %s3344_s3 = inlined_call_operand.vmem [shape: f32[200,16], index: 3, kind: input, shape index: {}]   ;;  %s3345_s4 = inlined_call_operand.vmem [shape: f32[200,16], index: 4, kind: input, shape index: {}]   ;;  %s3346_s5 = inlined_call_operand.vmem [shape: f32[16,34], index: 5, kind: input, shape index: {}]   ;;  %s3347_s6 = inlined_call_operand.vmem [shape: f32[16,34], index: 6, kind: input, shape index: {}]   ;;  %s3348_s7 = inlined_call_operand.vmem [shape: f32[16,34], index: 7, kind: input, shape index: {}]   ;;  %s3349_s8 = inlined_call_operand.vmem [shape: f32[16,34], index: 8, kind: input, shape index: {}]   ;;  %s3350_s9 = inlined_call_operand.vmem [shape: f32[16,34], index: 9, kind: input, shape index: {}]   ;;  %s3351_s10 = inlined_call_operand.vmem [shape: f32[1,34], index: 10, kind: input, shape index: {}]   ;;  %s3352_s11 = inlined_call_operand.vmem [shape: f32[1,34], index: 11, kind: input, shape index: {}]   ;;  %s3353_s12 = inlined_call_operand.hbm [shape: f32[1,200], index: 12, kind: output, shape index: {}]  }
   0x1   :  { %3354 = sst [smem:[#allocation5_spill]] %s3341_s0 }
   0x2   :  { %3355 = sst [smem:[#allocation6_spill]] %s3343_s2 }
   0x3   :  { %3356 = sst [smem:[#allocation7_spill]] %s3345_s4 }
   0x4   :  { %17 = vsyncpa [#allocation3], 0 }
   0x5   :  { %19 = vsyncpa [#allocation3 + $0x1], 0  ;;  %s2879_s21 = smov 0   ;;  %s2881_s22 = smov 0  }
   0x6   :  { %s2883_s23 = smov 0   ;;  %s2885_s24 = smov 0  }
   0x7 LB: > { %s2167_s25 = sadd.s32 4294967295, %s2806_s24   ;;  %s2168_s26 = sadd.s32 4294967294, %s2806_s24   ;;  %s2806_s24 = sphi %s2885_s24, %s3367_s24   ;;  %s2802_s23 = sphi %s2883_s23, %s3366_s23   ;;  %s2798_s22 = sphi %s2881_s22, %s3365_s22   ;;  %s2794_s21 = sphi %s2879_s21, %s3364_s21  }
   0x8   : > { %s2902_s27 = sadd.s32 1, %s2806_s24   ;;  %s309_s28 = sadd.s32 1, %s2802_s23 }
   0x9   : > { %s306_s29 = ssub.s32 %s2806_s24, %s2902_s27  ;;  %p319_p0 = scmp.ne.s32.totalorder %s2802_s23, %s2798_s22 }
   0xa   : > { %p307_p1 = scmp.eq.s32.totalorder %s306_s29, 0  ;;  %p320_p2 = scmp.eq.s32.totalorder %s2167_s25, 1 }
   0xb   : > { %p325_p3 = scmp.ne.s32.totalorder %s2798_s22, %s2794_s21  ;;  %p326_p4 = scmp.eq.s32.totalorder %s2168_s26, 1 }
   0xc   : > { %s2912_s30 = scalar_select %p307_p1, %s2802_s23, %s309_s28  }
   0xd   : > { %p2914_p5 = por %p320_p2, %p319_p0  ;;  %p2918_p6 = por %p326_p4, %p325_p3 }
   0xe   : > { %p2171_p7 = scmp.ge.s32.totalorder %s2806_s24, 1  ;;  %p450_p8 = scmp.lt.s32.totalorder %s2806_s24, 3 }
  0x10   : > { %p451_p9 = pnand %p2171_p7, %p450_p8 }
  0x11   : > { %s2924_s15 = sshll.u32 (!%p451_p9), %s2167_s25, 4  ;;  %v847_v0 = vld [vmem:[%s3348_s7] sm:$0xff] (!%p451_p9)  ;;  %v848_v1 = vld [vmem:[%s3348_s7 + $0x8] sm:$0xff] (!%p451_p9)  ;;  %v2808_v3 = vmov (!%p451_p9), 0   ;;  %s3359_s0 = sld [smem:[#allocation5_spill]] (!%p451_p9)  ;;  %vm849_vm0 = vcmask (!%p451_p9), 130048  }
  0x12   : > { %454 = sbr.rel (%p451_p9) target bundleno = 704 (0x2c0), region = 68  ;;  %v827_v2 = vld [vmem:[%s3346_s5] sm:$0xff] (!%p451_p9)  ;;  %2743 = vset.pattern.permute.xlu1 (!%p451_p9), %v2808_v3  ;;  %2742 = vset.pattern.permute.xlu0 (!%p451_p9), %v2808_v3  ;;  %p536_p10 = scmp.lt.s32.totalorder (!%p451_p9), %s2924_s15, 24  ;;  %v2598_v4 = vpack.c.bf16 (!%p451_p9), %v848_v1, %v847_v0  ;;  %v828_v5 = vld [vmem:[%s3346_s5 + $0x8] sm:$0xff] (!%p451_p9) }
  0x13   : > { %v1502_v6 = vld [vmem:[%s3350_s9] sm:$0xff] (!%p451_p9)  ;;  %v1503_v7 = vld [vmem:[%s3350_s9 + $0x8] sm:$0xff] (!%p451_p9)  ;;  %v2602_v8 = vpack.c.bf16 (!%p451_p9), %v828_v5, %v827_v2  ;;  %s3360_s2 = sld [smem:[#allocation6_spill]] (!%p451_p9)  ;;  %s3361_s4 = sld [smem:[#allocation7_spill]] (!%p451_p9) }
  0x14   : > { %v2610_v9 = vpack.c.bf16 (!%p451_p9), %v1503_v7, %v1502_v6  ;;  %2599 = vmatprep.subr.bf16.mxu0 (!%p451_p9), %v2598_v4  ;;  %v1252_v28 = vld [vmem:[%s3349_s8] sm:$0xff] (!%p451_p9)  ;;  %v1253_v29 = vld [vmem:[%s3349_s8 + $0x8] sm:$0xff] (!%p451_p9)  ;;  %s529_s18 = sand.u32 (!%p451_p9), 1, %s2798_s22  }
  0x15   : > { %2601 = vmatpush3.bf16.msra.mxu0 (!%p451_p9), %v2598_v4  ;;  %v829_v30 = vld [vmem:[%s3347_s6] sm:$0xff] (!%p451_p9)  ;;  %v830_v31 = vld [vmem:[%s3347_s6 + $0x8] sm:$0xff] (!%p451_p9)  ;;  %v3004_v34 = vpack.c.bf16 (!%p451_p9), %v1253_v29, %v1252_v28 }
  0x16   : > { %2611 = vmatprep.subr.bf16.mxu1 (!%p451_p9), %v2610_v9  ;;  %2603 = vmatprep.subr.bf16.mxu0 (!%p451_p9), %v2602_v8  ;;  %v2614_v35 = vpack.c.bf16 (!%p451_p9), %v830_v31, %v829_v30 }
  0x17   : > { %2613 = vmatpush3.bf16.msra.mxu1 (!%p451_p9), %v2610_v9 }
  0x18   : > { %2615 = vmatprep.subr.bf16.mxu1 (!%p451_p9), %v2614_v35 }
  0x19   : > { %s537_s19 = scalar_select %p536_p10, %s2924_s15, 24 }
  0x1b   : > { %s2946_s20 = sshll.u32 %s537_s19, 3  ;;  %s530_s19 = scalar_lea.vmem [#allocation2], %s529_s18 }
  0x1c   : > { %s2952_s28 = scalar_lea.vmem %s3359_s0, %s2946_s20  ;;  %s2964_s17 = scalar_lea.vmem %s3360_s2, %s2946_s20 }
  0x1d   : > { %v605_v10 = vld [vmem:[%s2952_s28 + $0x10] sm:$0xff]  ;;  %v603_v11 = vld [vmem:[%s2952_s28] sm:$0xff]  ;;  %v606_v12 = vld [vmem:[%s2952_s28 + $0x18] sm:$0xff]  ;;  %s2978_s26 = scalar_lea.vmem %s3361_s4, %s2946_s20  ;;  %s3031_s4 = scalar_lea.vmem %s3342_s1, %s2946_s20 }
  0x1e   : > { %626 = vperm.xlu1 %2743, %v605_v10   ;;  %620 = vperm.xlu0 %2742, %v603_v11   ;;  %v604_v13 = vld [vmem:[%s2952_s28 + $0x8] sm:$0xff]  ;;  %v607_v15 = vld [vmem:[%s2952_s28 + $0x20] sm:$0xff]  ;;  %v610_v16 = vld [vmem:[%s2952_s28 + $0x38] sm:$0xff]  ;;  %s2065_s0 = sshll.u32 %s530_s19, 4  ;;  %s3295_s0 = int_to_ptr.vmem [resolvable:$true] %s2065_s0 }
  0x1f   : > { %v608_v14 = vld [vmem:[%s2952_s28 + $0x28] sm:$0xff]  ;;  %v609_v17 = vld [vmem:[%s2952_s28 + $0x30] sm:$0xff]  ;;  %v831_v18 = vld [vmem:[%s2964_s17] sm:$0xff] }
  0x20   : > { %2427 = vmatprep.mubr.msk.f32.mxu0 %vm849_vm0, %v831_v18  ;;  %v832_v19 = vld [vmem:[%s2964_s17 + $0x8] sm:$0xff]  ;;  %v833_v20 = vld [vmem:[%s2964_s17 + $0x10] sm:$0xff]  ;;  %v834_v21 = vld [vmem:[%s2964_s17 + $0x18] sm:$0xff] }
  0x21   : > { %2428 = vmatmul.mubr.msk.f32.vlgmr.msra.gmra.mrb[0].mxu0 %vm849_vm0, %v832_v19  ;;  %v612_v22 = vld [vmem:[%s2952_s28 + $0x48] sm:$0xff]  ;;  %v611_v23 = vld [vmem:[%s2952_s28 + $0x40] sm:$0xff]  ;;  %v614_v32 = vld [vmem:[%s2952_s28 + $0x58] sm:$0xff] }
  0x22   : > { %629 = vperm.xlu1 %2743, %v606_v12   ;;  %623 = vperm.xlu0 %2742, %v604_v13   ;;  %v835_v24 = vld [vmem:[%s2964_s17 + $0x20] sm:$0xff]  ;;  %v836_v25 = vld [vmem:[%s2964_s17 + $0x28] sm:$0xff]  ;;  %v613_v33 = vld [vmem:[%s2952_s28 + $0x50] sm:$0xff] }
  0x23   : > { %2605 = vmatpush3.bf16.msra.mxu0 %v2602_v8  ;;  %2430 = vmatprep.mubr.msk.f32.mxu0 %vm849_vm0, %v833_v20  ;;  %v1486_v26 = vld [vmem:[%s2978_s26] sm:$0xff]  ;;  %v1487_v27 = vld [vmem:[%s2978_s26 + $0x8] sm:$0xff]  ;;  %v837_v36 = vld [vmem:[%s2964_s17 + $0x30] sm:$0xff]  ;;  %v2809_v20 = vmov 0.0  }
  0x24   : > { %2511 = vmatprep.mubr.msk.f32.mxu1 %vm849_vm0, %v1486_v26  ;;  %2607 = vmatprep.subr.bf16.mxu0 %v3004_v34  ;;  %v1488_v37 = vld [vmem:[%s2978_s26 + $0x10] sm:$0xff]  ;;  %v838_v38 = vld [vmem:[%s2964_s17 + $0x38] sm:$0xff]  ;;  %v616_v40 = vld [vmem:[%s2952_s28 + $0x68] sm:$0xff] }
  0x25   : > { %2431 = vmatmul.mubr.msk.f32.gmra.mrb[2].mxu0 %vm849_vm0, %v834_v21  ;;  %2512 = vmatmul.mubr.msk.f32.vlgmr.msra.gmra.mrb[0].mxu1 %vm849_vm0, %v1487_v27  ;;  %v1489_v39 = vld [vmem:[%s2978_s26 + $0x18] sm:$0xff]  ;;  %v615_v41 = vld [vmem:[%s2952_s28 + $0x60] sm:$0xff]  ;;  %v840_v44 = vld [vmem:[%s2964_s17 + $0x48] sm:$0xff] }
  0x26   : > { %635 = vperm.xlu1 %2743, %v608_v14   ;;  %632 = vperm.xlu0 %2742, %v607_v15   ;;  %v839_v42 = vld [vmem:[%s2964_s17 + $0x40] sm:$0xff]  ;;  %v1491_v45 = vld [vmem:[%s2978_s26 + $0x28] sm:$0xff]  ;;  %v618_v46 = vld [vmem:[%s2952_s28 + $0x78] sm:$0xff] }
  0x27   : > { %2433 = vmatprep.mubr.msk.f32.mxu0 %vm849_vm0, %v835_v24  ;;  %2514 = vmatprep.mubr.msk.f32.mxu1 %vm849_vm0, %v1488_v37  ;;  %v1490_v43 = vld [vmem:[%s2978_s26 + $0x20] sm:$0xff]  ;;  %v617_v47 = vld [vmem:[%s2952_s28 + $0x70] sm:$0xff]  ;;  %v842_v50 = vld [vmem:[%s2964_s17 + $0x58] sm:$0xff]  ;;  %s3301_s28 = scalar_lea.hbm %s3353_s12, %s2924_s15 }
  0x28   : > { %2617 = vmatpush3.bf16.msra.mxu1 %v2614_v35  ;;  %v841_v48 = vld [vmem:[%s2964_s17 + $0x50] sm:$0xff]  ;;  %v1493_v51 = vld [vmem:[%s2978_s26 + $0x38] sm:$0xff]  ;;  %v716_v52 = vld [vmem:[%s3031_s4 + $0x8] sm:$0xff] }
  0x29   : > { %2434 = vmatmul.mubr.msk.f32.gmra.mrb[4].mxu0 %vm849_vm0, %v836_v25  ;;  %2515 = vmatmul.mubr.msk.f32.gmra.mrb[2].mxu1 %vm849_vm0, %v1489_v39  ;;  %v1492_v49 = vld [vmem:[%s2978_s26 + $0x30] sm:$0xff]  ;;  %v715_v53 = vld [vmem:[%s3031_s4] sm:$0xff]  ;;  %v844_v56 = vld [vmem:[%s2964_s17 + $0x68] sm:$0xff] }
  0x2a   : > { %641 = vperm.xlu1 %2743, %v610_v16   ;;  %638 = vperm.xlu0 %2742, %v609_v17   ;;  %v843_v54 = vld [vmem:[%s2964_s17 + $0x60] sm:$0xff]  ;;  %v1495_v57 = vld [vmem:[%s2978_s26 + $0x48] sm:$0xff]  ;;  %v718_v58 = vld [vmem:[%s3031_s4 + $0x18] sm:$0xff]  ;;  %v601_v16 = vlaneseq }
  0x2b   : > { %2436 = vmatprep.mubr.msk.f32.mxu0 %vm849_vm0, %v837_v36  ;;  %2517 = vmatprep.mubr.msk.f32.mxu1 %vm849_vm0, %v1490_v43  ;;  %v1494_v55 = vld [vmem:[%s2978_s26 + $0x40] sm:$0xff]  ;;  %v717_v59 = vld [vmem:[%s3031_s4 + $0x10] sm:$0xff]  ;;  %v846_v62 = vld [vmem:[%s2964_s17 + $0x78] sm:$0xff] }
  0x2c   : > { %v845_v60 = vld [vmem:[%s2964_s17 + $0x70] sm:$0xff]  ;;  %v1497_v63 = vld [vmem:[%s2978_s26 + $0x58] sm:$0xff]  ;;  %v720_v0 = vld [vmem:[%s3031_s4 + $0x28] sm:$0xff]  ;;  %v3083_v17 = vand.u32 127, %v601_v16  ;;  %s2053_s17 = scalar_lea.sflag [#allocation3], %s529_s18 }
  0x2d   : > { %2437 = vmatmul.mubr.msk.f32.gmra.mrb[6].mxu0 %vm849_vm0, %v838_v38  ;;  %2518 = vmatmul.mubr.msk.f32.gmra.mrb[4].mxu1 %vm849_vm0, %v1491_v45  ;;  %v1496_v61 = vld [vmem:[%s2978_s26 + $0x50] sm:$0xff]  ;;  %v719_v1 = vld [vmem:[%s3031_s4 + $0x20] sm:$0xff]  ;;  %v1499_v3 = vld [vmem:[%s2978_s26 + $0x68] sm:$0xff] }
  0x2e   : > { %647 = vperm.xlu1 %2743, %v612_v22   ;;  %644 = vperm.xlu0 %2742, %v611_v23   ;;  %v1498_v2 = vld [vmem:[%s2978_s26 + $0x60] sm:$0xff]  ;;  %v722_v4 = vld [vmem:[%s3031_s4 + $0x38] sm:$0xff]  ;;  %v721_v5 = vld [vmem:[%s3031_s4 + $0x30] sm:$0xff] }
  0x2f   : > { %2439 = vmatprep.mubr.msk.f32.mxu0 %vm849_vm0, %v839_v42  ;;  %2520 = vmatprep.mubr.msk.f32.mxu1 %vm849_vm0, %v1492_v49  ;;  %v1500_v6 = vld [vmem:[%s2978_s26 + $0x70] sm:$0xff]  ;;  %v1501_v7 = vld [vmem:[%s2978_s26 + $0x78] sm:$0xff]  ;;  %v724_v8 = vld [vmem:[%s3031_s4 + $0x48] sm:$0xff]  ;;  %s3133_s26 = scalar_lea.vmem %s3344_s3, %s2946_s20  ;;  %s2813_s20 = smov [#allocation2]  }
  0x30   : > { %v723_v9 = vld [vmem:[%s3031_s4 + $0x40] sm:$0xff]  ;;  %v726_v10 = vld [vmem:[%s3031_s4 + $0x58] sm:$0xff]  ;;  %v725_v11 = vld [vmem:[%s3031_s4 + $0x50] sm:$0xff]  ;;  %s2748_s25 = sshll.u32 %s2813_s20, 4  ;;  %s2749_s25 = int_to_ptr.vmem [resolvable:$false] %s2748_s25 }
  0x31   : > { %2440 = vmatmul.mubr.msk.f32.gmra.mrb[8].mxu0 %vm849_vm0, %v840_v44  ;;  %2521 = vmatmul.mubr.msk.f32.gmra.mrb[6].mxu1 %vm849_vm0, %v1493_v51  ;;  %v728_v12 = vld [vmem:[%s3031_s4 + $0x68] sm:$0xff]  ;;  %v727_v13 = vld [vmem:[%s3031_s4 + $0x60] sm:$0xff]  ;;  %v730_v14 = vld [vmem:[%s3031_s4 + $0x78] sm:$0xff]  ;;  %s2750_s29 = scalar_lea.vmem %s2749_s25, 32  ;;  %p2751_p0 = scmp.lt.s32.totalorder %s3295_s0, %s2749_s25 }
  0x32   : > { %653 = vperm.xlu1 %2743, %v614_v32   ;;  %650 = vperm.xlu0 %2742, %v613_v33   ;;  %v729_v15 = vld [vmem:[%s3031_s4 + $0x70] sm:$0xff] }
  0x33   : > { %2442 = vmatprep.mubr.msk.f32.mxu0 %vm849_vm0, %v841_v48  ;;  %2523 = vmatprep.mubr.msk.f32.mxu1 %vm849_vm0, %v1494_v55 }
  0x35   : > { %2443 = vmatmul.mubr.msk.f32.gmra.mrb[10].mxu0 %vm849_vm0, %v842_v50  ;;  %2524 = vmatmul.mubr.msk.f32.gmra.mrb[8].mxu1 %vm849_vm0, %v1495_v57 }
  0x36   : > { %659 = vperm.xlu1 %2743, %v616_v40   ;;  %656 = vperm.xlu0 %2742, %v615_v41  }
  0x37   : > { %2445 = vmatprep.mubr.msk.f32.mxu0 %vm849_vm0, %v843_v54  ;;  %2526 = vmatprep.mubr.msk.f32.mxu1 %vm849_vm0, %v1496_v61 }
  0x39   : > { %2446 = vmatmul.mubr.msk.f32.gmra.mrb[12].mxu0 %vm849_vm0, %v844_v56  ;;  %2527 = vmatmul.mubr.msk.f32.gmra.mrb[10].mxu1 %vm849_vm0, %v1497_v63 }
  0x3a   : > { %665 = vperm.xlu1 %2743, %v618_v46   ;;  %662 = vperm.xlu0 %2742, %v617_v47  }
  0x3b   : > { %2448 = vmatprep.mubr.msk.f32.mxu0 %vm849_vm0, %v845_v60  ;;  %2529 = vmatprep.mubr.msk.f32.mxu1 %vm849_vm0, %v1498_v2 }
  0x3d   : > { %2449 = vmatmul.mubr.msk.f32.gmra.mrb[14].mxu0 %vm849_vm0, %v846_v62  ;;  %2530 = vmatmul.mubr.msk.f32.gmra.mrb[12].mxu1 %vm849_vm0, %v1499_v3 }
  0x3e   : > { %735 = vperm.xlu1 %2743, %v716_v52   ;;  %732 = vperm.xlu0 %2742, %v715_v53   ;;  %v1236_v52 = vld [vmem:[%s3133_s26] sm:$0xff] }
  0x3f   : > { %2532 = vmatprep.mubr.msk.f32.mxu1 %vm849_vm0, %v1500_v6  ;;  %v1241_v6 = vld [vmem:[%s3133_s26 + $0x28] sm:$0xff] }
  0x41   : > { %2533 = vmatmul.mubr.msk.f32.gmra.mrb[14].mxu1 %vm849_vm0, %v1501_v7  ;;  %v1242_v7 = vld [vmem:[%s3133_s26 + $0x30] sm:$0xff] }
  0x42   : > { %741 = vperm.xlu1 %2743, %v718_v58   ;;  %738 = vperm.xlu0 %2742, %v717_v59   ;;  %v1237_v58 = vld [vmem:[%s3133_s26 + $0x8] sm:$0xff]  ;;  %v1238_v59 = vld [vmem:[%s3133_s26 + $0x10] sm:$0xff] }
  0x46   : > { %747 = vperm.xlu1 %2743, %v720_v0   ;;  %744 = vperm.xlu0 %2742, %v719_v1   ;;  %v1239_v0 = vld [vmem:[%s3133_s26 + $0x18] sm:$0xff]  ;;  %v1240_v1 = vld [vmem:[%s3133_s26 + $0x20] sm:$0xff] }
  0x4a   : > { %753 = vperm.xlu1 %2743, %v722_v4   ;;  %750 = vperm.xlu0 %2742, %v721_v5  }
  0x4e   : > { %759 = vperm.xlu1 %2743, %v724_v8   ;;  %756 = vperm.xlu0 %2742, %v723_v9  }
  0x52   : > { %765 = vperm.xlu1 %2743, %v726_v10   ;;  %762 = vperm.xlu0 %2742, %v725_v11  }
  0x56   : > { %771 = vperm.xlu1 %2743, %v728_v12   ;;  %768 = vperm.xlu0 %2742, %v727_v13   ;;  %v1243_v12 = vld [vmem:[%s3133_s26 + $0x38] sm:$0xff]  ;;  %v1244_v13 = vld [vmem:[%s3133_s26 + $0x40] sm:$0xff] }
  0x5a   : > { %777 = vperm.xlu1 %2743, %v730_v14   ;;  %774 = vperm.xlu0 %2742, %v729_v15  }
  0x9d   : > { %v627_v18 = vpop.permute.xlu1 %626  ;;  %v621_v19 = vpop.permute.xlu0 %620 }
  0x9e   : > { %vm667_vm1 = vcmp.eq.s32.totalorder %v3083_v17, %v621_v19  ;;  %vm669_vm2 = vcmp.eq.s32.totalorder %v3083_v17, %v627_v18  ;;  %v1245_v19 = vld [vmem:[%s3133_s26 + $0x48] sm:$0xff] }
  0x9f   : > { %v2182_v21 = vsel %vm667_vm1, 1.0, %v2809_v20  ;;  %v2184_v24 = vsel %vm669_vm2, 1.0, %v2809_v20 }
  0xa0   : > { %2455 = vmatprep.mubr.msk.f32.mxu0 %vm849_vm0, %v2182_v21  ;;  %v1246_v21 = vld [vmem:[%s3133_s26 + $0x50] sm:$0xff] }
  0xa1   : > { %v630_v22 = vpop.permute.xlu1 %629  ;;  %v624_v23 = vpop.permute.xlu0 %623 }
  0xa2   : > { %vm668_vm3 = vcmp.eq.s32.totalorder %v3083_v17, %v624_v23  ;;  %vm670_vm4 = vcmp.eq.s32.totalorder %v3083_v17, %v630_v22 }
  0xa3   : > { %v2183_v25 = vsel %vm668_vm3, 1.0, %v2809_v20  ;;  %v2185_v28 = vsel %vm670_vm4, 1.0, %v2809_v20 }
  0xa4   : > { %2456 = vmatmul.mubr.msk.f32.vlgmr.msra.gmra.mrb[0].mxu0 %vm849_vm0, %v2183_v25 }
  0xa5   : > { %2609 = vmatpush3.bf16.msra.mxu0 %v3004_v34  ;;  %v636_v26 = vpop.permute.xlu1 %635  ;;  %2458 = vmatprep.mubr.msk.f32.mxu0 %vm849_vm0, %v2184_v24  ;;  %v633_v27 = vpop.permute.xlu0 %632 }
  0xa6   : > { %vm671_vm5 = vcmp.eq.s32.totalorder %v3083_v17, %v633_v27  ;;  %vm672_vm6 = vcmp.eq.s32.totalorder %v3083_v17, %v636_v26  ;;  %v1247_v26 = vld [vmem:[%s3133_s26 + $0x58] sm:$0xff]  ;;  %v1248_v27 = vld [vmem:[%s3133_s26 + $0x60] sm:$0xff] }
  0xa7   : > { %v2186_v29 = vsel %vm671_vm5, 1.0, %v2809_v20  ;;  %v2187_v32 = vsel %vm672_vm6, 1.0, %v2809_v20 }
  0xa8   : > { %2459 = vmatmul.mubr.msk.f32.gmra.mrb[2].mxu0 %vm849_vm0, %v2185_v28 }
  0xa9   : > { %v642_v30 = vpop.permute.xlu1 %641  ;;  %2461 = vmatprep.mubr.msk.f32.mxu0 %vm849_vm0, %v2186_v29  ;;  %v639_v31 = vpop.permute.xlu0 %638 }
  0xaa   : > { %vm673_vm7 = vcmp.eq.s32.totalorder %v3083_v17, %v639_v31  ;;  %vm674_vm8 = vcmp.eq.s32.totalorder %v3083_v17, %v642_v30 }
  0xab   : > { %v2188_v33 = vsel %vm673_vm7, 1.0, %v2809_v20  ;;  %v2189_v36 = vsel %vm674_vm8, 1.0, %v2809_v20 }
  0xac   : > { %2462 = vmatmul.mubr.msk.f32.gmra.mrb[4].mxu0 %vm849_vm0, %v2187_v32  ;;  %v1249_v32 = vld [vmem:[%s3133_s26 + $0x68] sm:$0xff] }
  0xad   : > { %v648_v34 = vpop.permute.xlu1 %647  ;;  %2464 = vmatprep.mubr.msk.f32.mxu0 %vm849_vm0, %v2188_v33  ;;  %v645_v35 = vpop.permute.xlu0 %644  ;;  %v1250_v33 = vld [vmem:[%s3133_s26 + $0x70] sm:$0xff] }
  0xae   : > { %vm675_vm9 = vcmp.eq.s32.totalorder %v3083_v17, %v645_v35  ;;  %vm676_vm10 = vcmp.eq.s32.totalorder %v3083_v17, %v648_v34 }
  0xaf   : > { %v2190_v37 = vsel %vm675_vm9, 1.0, %v2809_v20  ;;  %v2191_v40 = vsel %vm676_vm10, 1.0, %v2809_v20 }
  0xb0   : > { %2465 = vmatmul.mubr.msk.f32.gmra.mrb[6].mxu0 %vm849_vm0, %v2189_v36  ;;  %v1251_v36 = vld [vmem:[%s3133_s26 + $0x78] sm:$0xff]  ;;  %s2744_s26 = scalar_lea.vmem %s3295_s0, 16 }
  0xb1   : > { %v654_v38 = vpop.permute.xlu1 %653  ;;  %2467 = vmatprep.mubr.msk.f32.mxu0 %vm849_vm0, %v2190_v37  ;;  %v651_v39 = vpop.permute.xlu0 %650  ;;  %v2810_v37 = vmov 0.0|0.0   ;;  %p2745_p11 = scmp.ne.s32.totalorder %s3295_s0, %s2744_s26  ;;  %p2752_p1 = scmp.lt.s32.totalorder %s2750_s29, %s2744_s26 }
  0xb2   : > { %vm677_vm11 = vcmp.eq.s32.totalorder %v3083_v17, %v651_v39  ;;  %vm678_vm12 = vcmp.eq.s32.totalorder %v3083_v17, %v654_v38  ;;  %2618 = vmatprep.subr.bf16.mxu1 %v2810_v37  ;;  %v3225_v38 = vld [vmem:[%s3352_s11] ss:$0 sm:$0xff] }
  0xb3   : > { %v2192_v41 = vsel %vm677_vm11, 1.0, %v2809_v20  ;;  %v2193_v44 = vsel %vm678_vm12, 1.0, %v2809_v20  ;;  %p2746_p12 = pnand %p2745_p11, %p2914_p5  ;;  %p2753_p2 = por %p2752_p1, %p2751_p0 }
  0xb4   : > { %2468 = vmatmul.mubr.msk.f32.gmra.mrb[8].mxu0 %vm849_vm0, %v2191_v40  ;;  %v3230_v40 = vld [vmem:[%s3351_s10] ss:$0 sm:$0xff] }
  0xb5   : > { %v660_v42 = vpop.permute.xlu1 %659  ;;  %2470 = vmatprep.mubr.msk.f32.mxu0 %vm849_vm0, %v2192_v41  ;;  %v657_v43 = vpop.permute.xlu0 %656  ;;  %p2747_p13 = pneg %p2746_p12 }
  0xb6   : > { %vm679_vm13 = vcmp.eq.s32.totalorder %v3083_v17, %v657_v43  ;;  %vm680_vm14 = vcmp.eq.s32.totalorder %v3083_v17, %v660_v42 }
  0xb7   : > { %v2194_v45 = vsel %vm679_vm13, 1.0, %v2809_v20  ;;  %v2195_v48 = vsel %vm680_vm14, 1.0, %v2809_v20  ;;  %p2754_p3 = pnand %p2753_p2, %p2747_p13 }
  0xb8   : > { %2471 = vmatmul.mubr.msk.f32.gmra.mrb[10].mxu0 %vm849_vm0, %v2193_v44 }
  0xb9   : > { %v666_v46 = vpop.permute.xlu1 %665  ;;  %2473 = vmatprep.mubr.msk.f32.mxu0 %vm849_vm0, %v2194_v45  ;;  %v663_v47 = vpop.permute.xlu0 %662 }
  0xba   : > { %vm681_vm15 = vcmp.eq.s32.totalorder %v3083_v17, %v663_v47  ;;  %vm682_vm1 = vcmp.eq.s32.totalorder %v3083_v17, %v666_v46 }
  0xbb   : > { %v2196_v49 = vsel %vm681_vm15, 1.0, %v2809_v20  ;;  %v2197_v53 = vsel %vm682_vm1, 1.0, %v2809_v20 }
  0xbc   : > { %2474 = vmatmul.mubr.msk.f32.gmra.mrb[12].mxu0 %vm849_vm0, %v2195_v48 }
  0xbd   : > { %v736_v50 = vpop.permute.xlu1 %735  ;;  %2476 = vmatprep.mubr.msk.f32.mxu0 %vm849_vm0, %v2196_v49  ;;  %v733_v51 = vpop.permute.xlu0 %732 }
  0xbe   : > { %vm780_vm2 = vcmp.eq.s32.totalorder %v3083_v17, %v736_v50  ;;  %vm779_vm3 = vcmp.eq.s32.totalorder %v3083_v17, %v733_v51 }
  0xbf   : > { %v2199_v54 = vsel %vm780_vm2, 1.0, %v2809_v20  ;;  %v2198_v55 = vsel %vm779_vm3, 1.0, %v2809_v20  ;;  %vm2811_vm3 = vmmov 0  }
  0xc0   : > { %2477 = vmatmul.mubr.msk.f32.gmra.mrb[14].mxu0 %vm849_vm0, %v2197_v53  ;;  %2539 = vmatprep.mubr.msk.f32.mxu1 %vm849_vm0, %v2198_v55 }
  0xc1   : > { %v742_v56 = vpop.permute.xlu1 %741  ;;  %2540 = vmatmul.mubr.msk.f32.vlgmr.msra.gmra.mrb[0].mxu1 %vm849_vm0, %v2199_v54  ;;  %v739_v57 = vpop.permute.xlu0 %738  ;;  %2483 = vmatprep.mubr.msk.f32.mxu0 %vm849_vm0, %v1236_v52 }
  0xc2   : > { %vm782_vm4 = vcmp.eq.s32.totalorder %v3083_v17, %v742_v56  ;;  %vm781_vm5 = vcmp.eq.s32.totalorder %v3083_v17, %v739_v57 }
  0xc3   : > { %v2201_v60 = vsel %vm782_vm4, 1.0, %v2809_v20  ;;  %v2200_v61 = vsel %vm781_vm5, 1.0, %v2809_v20 }
  0xc4   : > { %2484 = vmatmul.mubr.msk.f32.vlgmr.msra.gmra.mrb[0].mxu0 %vm849_vm0, %v1237_v58  ;;  %2542 = vmatprep.mubr.msk.f32.mxu1 %vm849_vm0, %v2200_v61 }
  0xc5   : > { %v748_v62 = vpop.permute.xlu1 %747  ;;  %2543 = vmatmul.mubr.msk.f32.gmra.mrb[2].mxu1 %vm849_vm0, %v2201_v60  ;;  %v745_v63 = vpop.permute.xlu0 %744  ;;  %2486 = vmatprep.mubr.msk.f32.mxu0 %vm849_vm0, %v1238_v59 }
  0xc6   : > { %vm784_vm6 = vcmp.eq.s32.totalorder %v3083_v17, %v748_v62  ;;  %vm783_vm7 = vcmp.eq.s32.totalorder %v3083_v17, %v745_v63 }
  0xc7   : > { %v2203_v2 = vsel %vm784_vm6, 1.0, %v2809_v20  ;;  %v2202_v3 = vsel %vm783_vm7, 1.0, %v2809_v20 }
  0xc8   : > { %2487 = vmatmul.mubr.msk.f32.gmra.mrb[2].mxu0 %vm849_vm0, %v1239_v0  ;;  %2545 = vmatprep.mubr.msk.f32.mxu1 %vm849_vm0, %v2202_v3 }
  0xc9   : > { %v754_v4 = vpop.permute.xlu1 %753  ;;  %2546 = vmatmul.mubr.msk.f32.gmra.mrb[4].mxu1 %vm849_vm0, %v2203_v2  ;;  %v751_v5 = vpop.permute.xlu0 %750  ;;  %2489 = vmatprep.mubr.msk.f32.mxu0 %vm849_vm0, %v1240_v1 }
  0xca   : > { %vm786_vm8 = vcmp.eq.s32.totalorder %v3083_v17, %v754_v4  ;;  %vm785_vm9 = vcmp.eq.s32.totalorder %v3083_v17, %v751_v5 }
  0xcb   : > { %v2205_v8 = vsel %vm786_vm8, 1.0, %v2809_v20  ;;  %v2204_v9 = vsel %vm785_vm9, 1.0, %v2809_v20 }
  0xcc   : > { %2490 = vmatmul.mubr.msk.f32.gmra.mrb[4].mxu0 %vm849_vm0, %v1241_v6  ;;  %2548 = vmatprep.mubr.msk.f32.mxu1 %vm849_vm0, %v2204_v9 }
  0xcd   : > { %v760_v10 = vpop.permute.xlu1 %759  ;;  %2549 = vmatmul.mubr.msk.f32.gmra.mrb[6].mxu1 %vm849_vm0, %v2205_v8  ;;  %v757_v11 = vpop.permute.xlu0 %756  ;;  %2492 = vmatprep.mubr.msk.f32.mxu0 %vm849_vm0, %v1242_v7 }
  0xce   : > { %vm788_vm10 = vcmp.eq.s32.totalorder %v3083_v17, %v760_v10  ;;  %vm787_vm11 = vcmp.eq.s32.totalorder %v3083_v17, %v757_v11 }
  0xcf   : > { %v2207_v14 = vsel %vm788_vm10, 1.0, %v2809_v20  ;;  %v2206_v15 = vsel %vm787_vm11, 1.0, %v2809_v20 }
  0xd0   : > { %2493 = vmatmul.mubr.msk.f32.gmra.mrb[6].mxu0 %vm849_vm0, %v1243_v12  ;;  %2551 = vmatprep.mubr.msk.f32.mxu1 %vm849_vm0, %v2206_v15 }
  0xd1   : > { %v766_v16 = vpop.permute.xlu1 %765  ;;  %2552 = vmatmul.mubr.msk.f32.gmra.mrb[8].mxu1 %vm849_vm0, %v2207_v14  ;;  %v763_v18 = vpop.permute.xlu0 %762  ;;  %2495 = vmatprep.mubr.msk.f32.mxu0 %vm849_vm0, %v1244_v13 }
  0xd2   : > { %vm790_vm12 = vcmp.eq.s32.totalorder %v3083_v17, %v766_v16  ;;  %vm789_vm13 = vcmp.eq.s32.totalorder %v3083_v17, %v763_v18 }
  0xd3   : > { %v2209_v22 = vsel %vm790_vm12, 1.0, %v2809_v20  ;;  %v2208_v23 = vsel %vm789_vm13, 1.0, %v2809_v20 }
  0xd4   : > { %2496 = vmatmul.mubr.msk.f32.gmra.mrb[8].mxu0 %vm849_vm0, %v1245_v19  ;;  %2554 = vmatprep.mubr.msk.f32.mxu1 %vm849_vm0, %v2208_v23 }
  0xd5   : > { %v772_v24 = vpop.permute.xlu1 %771  ;;  %2555 = vmatmul.mubr.msk.f32.gmra.mrb[10].mxu1 %vm849_vm0, %v2209_v22  ;;  %v769_v25 = vpop.permute.xlu0 %768  ;;  %2498 = vmatprep.mubr.msk.f32.mxu0 %vm849_vm0, %v1246_v21 }
  0xd6   : > { %vm792_vm14 = vcmp.eq.s32.totalorder %v3083_v17, %v772_v24  ;;  %vm791_vm15 = vcmp.eq.s32.totalorder %v3083_v17, %v769_v25 }
  0xd7   : > { %v2211_v28 = vsel %vm792_vm14, 1.0, %v2809_v20  ;;  %v2210_v29 = vsel %vm791_vm15, 1.0, %v2809_v20 }
  0xd8   : > { %2499 = vmatmul.mubr.msk.f32.gmra.mrb[10].mxu0 %vm849_vm0, %v1247_v26  ;;  %2557 = vmatprep.mubr.msk.f32.mxu1 %vm849_vm0, %v2210_v29 }
  0xd9   : > { %v778_v30 = vpop.permute.xlu1 %777  ;;  %2558 = vmatmul.mubr.msk.f32.gmra.mrb[12].mxu1 %vm849_vm0, %v2211_v28  ;;  %v775_v31 = vpop.permute.xlu0 %774  ;;  %2501 = vmatprep.mubr.msk.f32.mxu0 %vm849_vm0, %v1248_v27 }
  0xda   : > { %vm794_vm1 = vcmp.eq.s32.totalorder %v3083_v17, %v778_v30  ;;  %vm793_vm2 = vcmp.eq.s32.totalorder %v3083_v17, %v775_v31 }
  0xdb   : > { %v2213_v34 = vsel %vm794_vm1, 1.0, %v2809_v20  ;;  %v2212_v35 = vsel %vm793_vm2, 1.0, %v2809_v20 }
  0xdc   : > { %2502 = vmatmul.mubr.msk.f32.gmra.mrb[12].mxu0 %vm849_vm0, %v1249_v32  ;;  %2560 = vmatprep.mubr.msk.f32.mxu1 %vm849_vm0, %v2212_v35 }
  0xdd   : > { %2561 = vmatmul.mubr.msk.f32.gmra.mrb[14].mxu1 %vm849_vm0, %v2213_v34  ;;  %2504 = vmatprep.mubr.msk.f32.mxu0 %vm849_vm0, %v1250_v33 }
  0xde   : > { %2595 = vmatprep.mubr.msk.f32.mxu1 %vm2811_vm3, %v2809_v20 }
  0xe0   : > { %2505 = vmatmul.mubr.msk.f32.gmra.mrb[14].mxu0 %vm849_vm0, %v1251_v36  ;;  %vm1929_vm0 = vcmask 277504  }
  0xe1   : > { %vm3240_vm4 = vmpackc.low %vm1929_vm0, %vm1929_vm0 }
 0x194   : > { %v2541_v17 = vpop.f32.mrb[0].mxu1 }
 0x195   : > { %v1811_v39 = vpop.f32.mrb[1].mxu1  ;;  %v1898_v42 = vadd.f32 %v2541_v17, %v3225_v38 }
 0x196   : > { %v1897_v20 = vadd.f32 %v3225_v38, %v1811_v39 }
 0x197   : > { %v2485_v41 = vpop.f32.mrb[0].mxu0 }
 0x198   : > { %v1471_v43 = vadd.f32 %v2485_v41, %v3230_v40  ;;  %v1368_v44 = vpop.f32.mrb[1].mxu0  ;;  %v2544_v45 = vpop.f32.mrb[2].mxu1 }
 0x199   : > { %v1470_v46 = vadd.f32 %v3230_v40, %v1368_v44  ;;  %v1821_v47 = vpop.f32.mrb[3].mxu1  ;;  %v1900_v51 = vadd.f32 %v2544_v45, %v3225_v38 }
 0x19a   : > { %v1914_v48 = vmul.f32 %v1898_v42, %v1471_v43  ;;  %v1899_v57 = vadd.f32 %v3225_v38, %v1821_v47 }
 0x19b   : > { %v1913_v49 = vmul.f32 %v1897_v20, %v1470_v46  ;;  %v2488_v50 = vpop.f32.mrb[2].mxu0 }
 0x19c   : > { %v1473_v52 = vadd.f32 %v2488_v50, %v3230_v40  ;;  %v1378_v53 = vpop.f32.mrb[3].mxu0  ;;  %v2547_v54 = vpop.f32.mrb[4].mxu1 }
 0x19d   : > { %v2619_v56 = vpack.c.bf16 %v1914_v48, %v1913_v49  ;;  %v1472_v58 = vadd.f32 %v3230_v40, %v1378_v53  ;;  %v1831_v59 = vpop.f32.mrb[5].mxu1  ;;  %v1902_v63 = vadd.f32 %v2547_v54, %v3225_v38 }
 0x19e   : > { %v1916_v60 = vmul.f32 %v1900_v51, %v1473_v52  ;;  %v1901_v4 = vadd.f32 %v3225_v38, %v1831_v59 }
 0x19f   : > { %v1915_v61 = vmul.f32 %v1899_v57, %v1472_v58  ;;  %v2491_v62 = vpop.f32.mrb[4].mxu0  ;;  %2621 = vmatpush3.bf16.xpose.msk.msra.mxu1 %vm3240_vm4, %v2619_v56 }
 0x1a0   : > { %v1475_v0 = vadd.f32 %v2491_v62, %v3230_v40  ;;  %v1388_v1 = vpop.f32.mrb[5].mxu0  ;;  %v2550_v2 = vpop.f32.mrb[6].mxu1  ;;  %2622 = vmatprep.subr.bf16.mxu1 %v2810_v37 }
 0x1a1   : > { %v2623_v3 = vpack.c.bf16 %v1916_v60, %v1915_v61  ;;  %v1474_v5 = vadd.f32 %v3230_v40, %v1388_v1  ;;  %v1841_v6 = vpop.f32.mrb[7].mxu1  ;;  %v1904_v10 = vadd.f32 %v2550_v2, %v3225_v38 }
 0x1a2   : > { %v1918_v7 = vmul.f32 %v1902_v63, %v1475_v0  ;;  %v1903_v15 = vadd.f32 %v3225_v38, %v1841_v6 }
 0x1a3   : > { %v1917_v8 = vmul.f32 %v1901_v4, %v1474_v5  ;;  %v2494_v9 = vpop.f32.mrb[6].mxu0 }
 0x1a4   : > { %v1477_v11 = vadd.f32 %v2494_v9, %v3230_v40  ;;  %v1398_v12 = vpop.f32.mrb[7].mxu0  ;;  %v2553_v13 = vpop.f32.mrb[8].mxu1 }
 0x1a5   : > { %v2627_v14 = vpack.c.bf16 %v1918_v7, %v1917_v8  ;;  %v1476_v16 = vadd.f32 %v3230_v40, %v1398_v12  ;;  %v1851_v18 = vpop.f32.mrb[9].mxu1  ;;  %v1906_v23 = vadd.f32 %v2553_v13, %v3225_v38 }
 0x1a6   : > { %v1920_v19 = vmul.f32 %v1904_v10, %v1477_v11  ;;  %v1905_v28 = vadd.f32 %v3225_v38, %v1851_v18 }
 0x1a7   : > { %v1919_v21 = vmul.f32 %v1903_v15, %v1476_v16  ;;  %v2497_v22 = vpop.f32.mrb[8].mxu0  ;;  %2625 = vmatpush3.bf16.xpose.msk.msra.mxu1 %vm3240_vm4, %v2623_v3 }
 0x1a8   : > { %v1479_v24 = vadd.f32 %v2497_v22, %v3230_v40  ;;  %v1408_v25 = vpop.f32.mrb[9].mxu0  ;;  %v2556_v26 = vpop.f32.mrb[10].mxu1  ;;  %2626 = vmatprep.subr.bf16.mxu1 %v2810_v37 }
 0x1a9   : > { %v2631_v27 = vpack.c.bf16 %v1920_v19, %v1919_v21  ;;  %v1478_v29 = vadd.f32 %v3230_v40, %v1408_v25  ;;  %v1861_v30 = vpop.f32.mrb[11].mxu1  ;;  %v1908_v34 = vadd.f32 %v2556_v26, %v3225_v38 }
 0x1aa   : > { %v1922_v31 = vmul.f32 %v1906_v23, %v1479_v24  ;;  %v1907_v41 = vadd.f32 %v3225_v38, %v1861_v30 }
 0x1ab   : > { %v1921_v32 = vmul.f32 %v1905_v28, %v1478_v29  ;;  %v2500_v33 = vpop.f32.mrb[10].mxu0 }
 0x1ac   : > { %v1481_v35 = vadd.f32 %v2500_v33, %v3230_v40  ;;  %v1418_v36 = vpop.f32.mrb[11].mxu0  ;;  %v2559_v17 = vpop.f32.mrb[12].mxu1 }
 0x1ad   : > { %v2635_v39 = vpack.c.bf16 %v1922_v31, %v1921_v32  ;;  %v1480_v42 = vadd.f32 %v3230_v40, %v1418_v36  ;;  %v1871_v43 = vpop.f32.mrb[13].mxu1  ;;  %v1910_v46 = vadd.f32 %v2559_v17, %v3225_v38 }
 0x1ae   : > { %v1924_v44 = vmul.f32 %v1908_v34, %v1481_v35  ;;  %v1909_v51 = vadd.f32 %v3225_v38, %v1871_v43 }
 0x1af   : > { %v1923_v45 = vmul.f32 %v1907_v41, %v1480_v42  ;;  %v2503_v20 = vpop.f32.mrb[12].mxu0  ;;  %2629 = vmatpush3.bf16.xpose.msk.msra.mxu1 %vm3240_vm4, %v2627_v14 }
 0x1b0   : > { %v1483_v47 = vadd.f32 %v2503_v20, %v3230_v40  ;;  %v1428_v48 = vpop.f32.mrb[13].mxu0  ;;  %v2562_v49 = vpop.f32.mrb[14].mxu1  ;;  %2630 = vmatprep.subr.bf16.mxu1 %v2810_v37 }
 0x1b1   : > { %v2639_v50 = vpack.c.bf16 %v1924_v44, %v1923_v45  ;;  %v1482_v52 = vadd.f32 %v3230_v40, %v1428_v48  ;;  %v1881_v53 = vpop.f32.mrb[15].mxu1  ;;  %v1912_v58 = vadd.f32 %v2562_v49, %v3225_v38 }
 0x1b2   : > { %v1926_v54 = vmul.f32 %v1910_v46, %v1483_v47  ;;  %v1911_v62 = vadd.f32 %v3225_v38, %v1881_v53  ;;  %v2812_v38 = vmov 1.0  }
 0x1b3   : > { %v1925_v56 = vmul.f32 %v1909_v51, %v1482_v52  ;;  %v2506_v57 = vpop.f32.mrb[14].mxu0 }
 0x1b4   : > { %v1485_v59 = vadd.f32 %v2506_v57, %v3230_v40  ;;  %v1438_v60 = vpop.f32.mrb[15].mxu0 }
 0x1b5   : > { %v2643_v61 = vpack.c.bf16 %v1926_v54, %v1925_v56  ;;  %v1484_v63 = vadd.f32 %v3230_v40, %v1438_v60 }
 0x1b6   : > { %v1928_v0 = vmul.f32 %v1912_v58, %v1485_v59 }
 0x1b7   : > { %v1927_v1 = vmul.f32 %v1911_v62, %v1484_v63  ;;  %2633 = vmatpush3.bf16.xpose.msk.msra.mxu1 %vm3240_vm4, %v2631_v27 }
 0x1b8   : > { %2634 = vmatprep.subr.bf16.mxu1 %v2810_v37 }
 0x1b9   : > { %v2647_v2 = vpack.c.bf16 %v1928_v0, %v1927_v1 }
 0x1bf   : > { %2637 = vmatpush3.bf16.xpose.msk.msra.mxu1 %vm3240_vm4, %v2635_v39 }
 0x1c0   : > { %2638 = vmatprep.subr.bf16.mxu1 %v2810_v37 }
 0x1c7   : > { %2641 = vmatpush3.bf16.xpose.msk.msra.mxu1 %vm3240_vm4, %v2639_v50 }
 0x1c8   : > { %2642 = vmatprep.subr.bf16.mxu1 %v2810_v37 }
 0x1cf   : > { %2645 = vmatpush3.bf16.xpose.msk.msra.mxu1 %vm3240_vm4, %v2643_v61 }
 0x1d0   : > { %2646 = vmatprep.subr.bf16.mxu1 %v2810_v37 }
 0x1d7   : > { %2649 = vmatpush3.bf16.xpose.msk.msra.mxu1 %vm3240_vm4, %v2647_v2 }
 0x1de   : > { %2596 = vmatmul.mubr.msk.f32.vlgmr.msra.gmra.mrb[16].mxu1 %vm1929_vm0, %v2812_v38 }
 0x2b1   : > { %v2047_v37 = vpop.f32.mrb[16].mxu1 }
 0x2b2   : > { %2051 = vst [vmem:[%s530_s19] sm:$0x1] %v2047_v37  ;;  %v2597_v40 = vpop.f32.mrb[17].mxu1 }
 0x2b3   : > { %2757 = shalt.err (!%p2754_p3)
}
 0x2b4   : > { %s2758_s15 = scalar_lea.hbm %s3301_s28, 16  ;;  %s2762_s19 = scalar_lea.hbm %s3353_s12, 32 }
 0x2b5   : > { %p2759_p4 = scmp.ne.s32.totalorder %s3301_s28, %s2758_s15  ;;  %p2763_p9 = scmp.lt.u32.totalorder %s3301_s28, %s3353_s12 }
 0x2b6   : > { %p2764_p10 = scmp.lt.u32.totalorder %s2762_s19, %s2758_s15  ;;  %p2766_p12 = scmp.lt.u32.totalorder %s2758_s15, %s3301_s28 }
 0x2b7   : > { %p2760_p7 = pnand %p2759_p4, %p2914_p5 }
 0x2b8   : > { %p2765_p11 = por %p2764_p10, %p2763_p9 }
 0x2b9   : > { %p2761_p8 = pneg %p2760_p7 }
 0x2ba   : > { %p2767_p13 = por %p2766_p12, %p2765_p11 }
 0x2bc   : > { %p2768_p0 = pnand %p2767_p13, %p2761_p8 }
 0x2be   : > { %2771 = shalt.err (!%p2768_p0)
}
 0x2bf   : > { %2698 = dma.vmem_to_hbm [thread:$0]  (%p2914_p5), %s3295_s0, 16, %s3301_s28, %s2053_s17  }
 0x2c0 PF: > { %p2704_p1 = scmp.ge.s32.totalorder %s2806_s24, 2  ;;  %s2077_s26 = sand.u32 1, %s2794_s21  }
 0x2c1   : > { %s2078_s20 = scalar_lea.sflag [#allocation3], %s2077_s26 }
 0x2c2   : > { %p2701_p2 = pnand %p2704_p1, %p2918_p6 }
 0x2c4   : > { %2789 = dma.done.wait (!%p2701_p2), %s2078_s20, 16  }
 0x2c5   : > { %2791 = vsyncadd (!%p2701_p2), %s2078_s20, 4294967280  ;;  %p22_p3 = scmp.ge.s32.totalorder %s2902_s27, 4   ;;  %s3364_s21 = smov %s2798_s22 }
 0x2c6   : > { %s3365_s22 = smov %s2802_s23  ;;  %s3366_s23 = smov %s2912_s30 }
 0x2c7   : > { %s3367_s24 = smov %s2902_s27  ;;  %24 = sbr.rel (!%p22_p3) target bundleno = 7 (0x7), region = 115 }
 0x2ce   :  { %2082 = vsyncpa [#allocation3], 1 }
 0x2cf   :  { %2084 = vsyncpa [#allocation3 + $0x1], 1 }

</bundles_post_ra>
